<compile_context>
chip_gen: v5e
topology: v5e:2x2
jax: 0.10.0
libtpu: 0.0.40
codegen_flags: <defaults>
</compile_context>

<pallas_src>
import functools

import jax
import jax.numpy as jnp
from jax.experimental import pallas as pl
from jax.experimental.pallas import tpu as pltpu


def _round_up(n: int, m: int) -> int:
    return ((n + m - 1) // m) * m


def _residual_kernel(alpha_ref, beta_ref, x_ref, w_ref, b_ref, o_ref, *,
                     eps, approx_recip):
    # alpha_ref/beta_ref: SMEM (1,) scalar-prefetch refs
    # x_ref: [TILE_R, D] f32   w_ref: [D, D] bf16 (resident)   b_ref: [1, D] f32
    x = x_ref[...].astype(jnp.float32)
    d = x.shape[-1]

    # --- LayerNormalization (unbiased std, scalar affine) ---
    mean = jnp.mean(x, axis=-1, keepdims=True)
    centered = x - mean
    var_unbiased = jnp.sum(centered * centered, axis=-1, keepdims=True) / (d - 1)
    std = jnp.sqrt(var_unbiased)
    inv = pl.reciprocal(std + eps, approx=approx_recip)   # EUP slot, ~free
    scale = alpha_ref[0] * inv                            # fold alpha into [R,1]
    normed = centered * scale + beta_ref[0]

    # --- sublayer: dense layer on the MXU (bf16 in, f32 accumulate) ---
    # NOTE: at D=128 this fills one 128x128 quadrant of the v6e/v7x MXU; fine
    # while the kernel is DMA-bound, retile N/K >= 256 if d_model grows.
    sub = jnp.dot(normed.astype(jnp.bfloat16), w_ref[...],
                  preferred_element_type=jnp.float32)
    sub = sub + b_ref[...].astype(jnp.float32)

    # --- dropout (eval mode => identity) + residual add, single store ---
    o_ref[...] = (x + sub).astype(o_ref.dtype)


def residual_connection(x, w, b, alpha, beta, *, eps=1e-6, tile_rows=2048,
                        approx_recip=True):
    """x: [B, S, D] float32. Returns x + sublayer(LayerNorm(x)).

    `w` should already be bf16 (cast once at parameter-init time); a fallback
    cast is applied here if it is not.
    """
    B, S, D = x.shape
    assert D >= 2, "unbiased std (ddof=1) requires d_model >= 2"
    R = B * S
    x2 = x.reshape(R, D)
    w_bf = w if w.dtype == jnp.bfloat16 else w.astype(jnp.bfloat16)
    b2 = b.reshape(1, D).astype(jnp.float32)

    # --- Row-tile selection -------------------------------------------------
    # Aim for large tiles (amortize ~0.35us/step), >= 2 grid steps when R >= 16
    # (so v7x's two TensorCores both get work), and bounded padding
    # (< 8 rows per grid step instead of up to tr-1 rows).
    tile_cap = max(8, _round_up(min(int(tile_rows), R), 8))
    n_steps = pl.cdiv(R, tile_cap)
    if n_steps == 1 and R >= 16:
        n_steps = 2
    tr = _round_up(pl.cdiv(R, n_steps), 8)
    R_pad = tr * n_steps
    if R_pad != R:
        # Zero pad rows are safe: centered == 0, so normed == beta -> finite
        # garbage in padded output rows, which is sliced off below. Do NOT
        # alias the padded output back into x without keeping that slice.
        x2 = jnp.pad(x2, ((0, R_pad - R), (0, 0)))
    grid = (n_steps,)

    # --- VMEM budget ---------------------------------------------------------
    # Double-buffered x & out tiles (f32) + resident bf16 W + bias + Mosaic
    # internal scratch headroom. Cap at 48 MiB (v7x physical VMEM is 64 MiB/TC).
    vmem_needed = (2 * 2 * tr * D * 4) + (D * D * 2) + (4 * _round_up(D, 128)) \
                  + (4 << 20)
    vmem_limit = int(min(max(vmem_needed, 16 << 20), 48 << 20))

    cost = pl.CostEstimate(
        flops=2 * R_pad * D * D + 10 * R_pad * D,
        transcendentals=2 * R_pad,                      # sqrt + reciprocal / row
        bytes_accessed=2 * R_pad * D * 4 + D * D * 2 + D * 4,
    )

    out = pl.pallas_call(
        functools.partial(_residual_kernel, eps=eps, approx_recip=approx_recip),
        out_shape=jax.ShapeDtypeStruct((R_pad, D), x.dtype),
        grid_spec=pltpu.PrefetchScalarGridSpec(
            num_scalar_prefetch=2,                       # alpha, beta -> SMEM
            grid=grid,
            in_specs=[
                pl.BlockSpec((tr, D), lambda i, a, bt: (i, 0)),   # x rows (pipelined)
                pl.BlockSpec((D, D), lambda i, a, bt: (0, 0)),    # W (VMEM-resident)
                pl.BlockSpec((1, D), lambda i, a, bt: (0, 0)),    # bias (VMEM-resident)
            ],
            out_specs=pl.BlockSpec((tr, D), lambda i, a, bt: (i, 0)),
        ),
        compiler_params=pltpu.CompilerParams(
            dimension_semantics=("parallel",),           # v7x: shard rows over 2 TCs
            vmem_limit_bytes=vmem_limit,
        ),
        cost_estimate=cost,
    )(alpha, beta, x2, w_bf, b2)

    return out[:R].reshape(B, S, D)


def _reference(x, w, b, alpha, beta, eps=1e-6):
    mean = jnp.mean(x, axis=-1, keepdims=True)
    std = jnp.std(x, axis=-1, keepdims=True, ddof=1)   # unbiased, like torch.std
    normed = alpha[0] * (x - mean) / (std + eps) + beta[0]
    sub = normed @ w + b
    return x + sub


if __name__ == "__main__":
    key = jax.random.PRNGKey(0)
    B, S, D = 2, 8, 128   # d_model = 128 keeps the lane axis dense

    kx, kw, kb = jax.random.split(key, 3)
    x = jax.random.normal(kx, (B, S, D), dtype=jnp.float32)
    w = jax.random.normal(kw, (D, D), dtype=jnp.float32) * 0.05
    b = jax.random.normal(kb, (D,), dtype=jnp.float32) * 0.05

    # LayerNormalization parameters at their __init__ values.
    alpha = jnp.ones((1,), dtype=jnp.float32)
    beta = jnp.zeros((1,), dtype=jnp.float32)

    # Cast W to bf16 once, outside the hot path (per-call cast is a per-layer
    # per-step HBM tax at production d_model).
    w_bf16 = w.astype(jnp.bfloat16)

    out = residual_connection(x, w_bf16, b, alpha, beta)
    out = jax.block_until_ready(out)

    ref = _reference(x, w, b, alpha, beta)
    assert out.shape == (B, S, D)
    # Tolerance loosened for bf16 MXU inputs + approx EUP reciprocal.
    assert jnp.allclose(out, ref, atol=2e-2, rtol=2e-2), "mismatch vs reference"

    print("KERNEL_OK")
</pallas_src>

<mosaic_0001>
module attributes {stable_mosaic.version = 11 : i64} {
  func.func @_residual_kernel(%arg0: i32, %arg1: memref<1xf32, #tpu.memory_space<smem>>, %arg2: memref<1xf32, #tpu.memory_space<smem>>, %arg3: memref<8x128xf32, #tpu.memory_space<vmem>>, %arg4: memref<128x128xbf16, #tpu.memory_space<vmem>>, %arg5: memref<1x128xf32, #tpu.memory_space<vmem>>, %arg6: memref<8x128xf32, #tpu.memory_space<vmem>>) attributes {dimension_semantics = [#tpu.dimension_semantics<parallel>], iteration_bounds = array<i64: 2>, scalar_prefetch = 2 : i64, scratch_operands = 0 : i64, tpu.core_type = #tpu.core_type<tc>, window_params = [{transform_indices = @transform_0, window_bounds = array<i64: 8, 128>}, {pipeline_mode = #tpu.pipeline_mode<synchronous>, transform_indices = @transform_1, window_bounds = array<i64: 128, 128>}, {pipeline_mode = #tpu.pipeline_mode<synchronous>, transform_indices = @transform_2, window_bounds = array<i64: 1, 128>}, {transform_indices = @transform_3, window_bounds = array<i64: 8, 128>}]} {
    %c0 = arith.constant 0 : index
    %c0_0 = arith.constant 0 : index
    %0 = vector.load %arg3[%c0, %c0_0] : memref<8x128xf32, #tpu.memory_space<vmem>>, vector<8x128xf32>
    %cst = arith.constant dense<0.000000e+00> : vector<8xf32>
    %1 = vector.multi_reduction <add>, %0, %cst [1] : vector<8x128xf32> to vector<8xf32>
    %2 = vector.shape_cast %1 : vector<8xf32> to vector<8x1xf32>
    %cst_1 = arith.constant 1.280000e+02 : f32
    %3 = vector.broadcast %cst_1 : f32 to vector<8x1xf32>
    %4 = arith.divf %2, %3 : vector<8x1xf32>
    %5 = vector.broadcast %4 : vector<8x1xf32> to vector<8x128xf32>
    %6 = arith.subf %0, %5 : vector<8x128xf32>
    %7 = arith.mulf %6, %6 : vector<8x128xf32>
    %cst_2 = arith.constant dense<0.000000e+00> : vector<8xf32>
    %8 = vector.multi_reduction <add>, %7, %cst_2 [1] : vector<8x128xf32> to vector<8xf32>
    %9 = vector.shape_cast %8 : vector<8xf32> to vector<8x1xf32>
    %cst_3 = arith.constant 1.270000e+02 : f32
    %10 = vector.broadcast %cst_3 : f32 to vector<8x1xf32>
    %11 = arith.divf %9, %10 : vector<8x1xf32>
    %12 = math.sqrt %11 : vector<8x1xf32>
    %cst_4 = arith.constant 9.99999997E-7 : f32
    %13 = vector.broadcast %cst_4 : f32 to vector<8x1xf32>
    %14 = arith.addf %12, %13 : vector<8x1xf32>
    %15 = tpu.reciprocal %14 {approx = true} : vector<8x1xf32> -> vector<8x1xf32>
    %c0_5 = arith.constant 0 : index
    %16 = memref.load %arg1[%c0_5] : memref<1xf32, #tpu.memory_space<smem>>
    %17 = vector.broadcast %16 : f32 to vector<8x1xf32>
    %18 = arith.mulf %17, %15 : vector<8x1xf32>
    %19 = vector.broadcast %18 : vector<8x1xf32> to vector<8x128xf32>
    %20 = arith.mulf %6, %19 : vector<8x128xf32>
    %c0_6 = arith.constant 0 : index
    %21 = memref.load %arg2[%c0_6] : memref<1xf32, #tpu.memory_space<smem>>
    %22 = vector.broadcast %21 : f32 to vector<8x128xf32>
    %23 = arith.addf %20, %22 : vector<8x128xf32>
    %24 = arith.truncf %23 : vector<8x128xf32> to vector<8x128xbf16>
    %c0_7 = arith.constant 0 : index
    %c0_8 = arith.constant 0 : index
    %25 = vector.load %arg4[%c0_7, %c0_8] : memref<128x128xbf16, #tpu.memory_space<vmem>>, vector<128x128xbf16>
    %cst_9 = arith.constant dense<0.000000e+00> : vector<8x128xf32>
    %26 = tpu.matmul %24, %25, %cst_9 {dimension_numbers = #tpu.dot_dimension_numbers<[1], [0], [0], [1], [0, 0, 1, 1], [], []>} : vector<8x128xbf16>, vector<128x128xbf16>, vector<8x128xf32> -> vector<8x128xf32>
    %c0_10 = arith.constant 0 : index
    %c0_11 = arith.constant 0 : index
    %27 = vector.load %arg5[%c0_10, %c0_11] : memref<1x128xf32, #tpu.memory_space<vmem>>, vector<1x128xf32>
    %28 = vector.broadcast %27 : vector<1x128xf32> to vector<8x128xf32>
    %29 = arith.addf %26, %28 : vector<8x128xf32>
    %30 = arith.addf %0, %29 : vector<8x128xf32>
    %c0_12 = arith.constant 0 : index
    %c0_13 = arith.constant 0 : index
    %31 = vector.load %arg6[%c0_12, %c0_13] : memref<8x128xf32, #tpu.memory_space<vmem>>, vector<8x128xf32>
    tpu.vector_store %arg6[%c0_12, %c0_13], %30 {strides = array<i32>} : memref<8x128xf32, #tpu.memory_space<vmem>>, vector<8x128xf32>,
    return
  }
  func.func @transform_0(%arg0: i32, %arg1: memref<1xf32, #tpu.memory_space<smem>>, %arg2: memref<1xf32, #tpu.memory_space<smem>>) -> (i32, i32) {
    %c0_i32 = arith.constant 0 : i32
    %c0_i32_0 = arith.constant 0 : i32
    return %arg0, %c0_i32 : i32, i32
  }
  func.func @transform_1(%arg0: i32, %arg1: memref<1xf32, #tpu.memory_space<smem>>, %arg2: memref<1xf32, #tpu.memory_space<smem>>) -> (i32, i32) {
    %c0_i32 = arith.constant 0 : i32
    %c0_i32_0 = arith.constant 0 : i32
    %c0_i32_1 = arith.constant 0 : i32
    return %c0_i32, %c0_i32_0 : i32, i32
  }
  func.func @transform_2(%arg0: i32, %arg1: memref<1xf32, #tpu.memory_space<smem>>, %arg2: memref<1xf32, #tpu.memory_space<smem>>) -> (i32, i32) {
    %c0_i32 = arith.constant 0 : i32
    %c0_i32_0 = arith.constant 0 : i32
    %c0_i32_1 = arith.constant 0 : i32
    return %c0_i32, %c0_i32_0 : i32, i32
  }
  func.func @transform_3(%arg0: i32, %arg1: memref<1xf32, #tpu.memory_space<smem>>, %arg2: memref<1xf32, #tpu.memory_space<smem>>) -> (i32, i32) {
    %c0_i32 = arith.constant 0 : i32
    %c0_i32_0 = arith.constant 0 : i32
    return %arg0, %c0_i32 : i32, i32
  }
}

</mosaic_0001>

<bundles_post_ra>
// kernel: tpu_custom_call.1
= control target key start
LH: loop header
LB: loop body
LE: loop exit
PB: predicated region body
PF: predicated region fallthrough
CT: control target
= control target key end

     0   :  { %s878_s0 = inlined_call_operand.<no memory space> [shape: f32[1], index: 0, kind: input, shape index: {}]   ;;  %s879_s1 = inlined_call_operand.<no memory space> [shape: f32[1], index: 1, kind: input, shape index: {}]   ;;  %s880_s2 = inlined_call_operand.hbm [shape: f32[16,128], index: 2, kind: input, shape index: {}]   ;;  %s881_s3 = inlined_call_operand.hbm [shape: bf16[128,128], index: 3, kind: input, shape index: {}]   ;;  %s882_s4 = inlined_call_operand.vmem [shape: f32[1,128], index: 4, kind: input, shape index: {}]   ;;  %s883_s5 = inlined_call_operand.hbm [shape: f32[16,128], index: 5, kind: output, shape index: {}]  }
   0x1   :  { %10 = sst [smem:[#allocation3]] %s878_s0 }
   0x2   :  { %11 = sst [smem:[#allocation4]] %s879_s1 }
   0x3   :  { %12 = vsyncpa [#allocation6], 0 }
   0x4   :  { %14 = vsyncpa [#allocation6 + $0x1], 0 }
   0x5   :  { %15 = vsyncpa [#allocation9], 0 }
   0x6   :  { %16 = vsyncpa [#allocation7], 0 }
   0x7   :  { %18 = vsyncpa [#allocation7 + $0x1], 0  ;;  %s730_s22 = smov 0   ;;  %s732_s23 = smov 0  }
   0x8   :  { %s734_s24 = smov 0   ;;  %s736_s25 = smov 0  }
   0x9 LB: > { %s134_s26 = sshll.u32 %s881_s3, 4  ;;  %s754_s27 = sadd.s32 4294967295, %s687_s25   ;;  %s687_s25 = sphi %s736_s25, %s893_s25   ;;  %s683_s24 = sphi %s734_s24, %s892_s24   ;;  %s679_s23 = sphi %s732_s23, %s891_s23   ;;  %s675_s22 = sphi %s730_s22, %s890_s22   ;;  %s135_s26 = int_to_ptr.hbm [resolvable:$true] %s134_s26 }
   0xa   : > { %p434_p0 = scmp.ge.s32.totalorder %s687_s25, 1  ;;  %p45_p1 = scmp.eq.s32.totalorder %s754_s27, 0 }
   0xb   : > { %p123_p2 = scmp.lt.s32.totalorder %s687_s25, 3  ;;  %s689_s29 = smov [#allocation8]  }
   0xc   : > { %s136_s30 = sshll.u32 %s689_s29, 4  ;;  %s690_s6 = smov 64   ;;  %s137_s30 = int_to_ptr.vmem [resolvable:$true] %s136_s30 }
   0xd   : > { %p759_p3 = pnand %p434_p0, %p123_p2  ;;  %s691_s7 = smov 4  }
   0xe   : > { %s433_s8 = sadd.s32 4294967294, %s687_s25   ;;  %s770_s9 = sadd.s32 1, %s687_s25  }
   0xf   : > { %p495_p4 = pneg %p759_p3  ;;  %s31_s10 = sadd.s32 1, %s683_s24 }
  0x10   : > { %s28_s11 = ssub.s32 %s687_s25, %s770_s9  ;;  %p38_p7 = scmp.ne.s32.totalorder %s683_s24, %s679_s23 }
  0x11   : > { %p496_p6 = pnand %p495_p4, %p45_p1  ;;  %p29_p8 = scmp.eq.s32.totalorder %s28_s11, 0 }
  0x12   : > { %p39_p9 = scmp.eq.s32.totalorder %s687_s25, 0  ;;  %p44_p10 = scmp.ne.s32.totalorder %s679_s23, %s675_s22 }
  0x13   : > { %498 = dma.hbm_to_vmem [thread:$0]  (!%p496_p6), %s135_s26, 1024, %s137_s30, [#allocation9], %s690_s6, %s690_s6, %s691_s7  }
  0x14   : > { %p110_p11 = scmp.eq.s32.totalorder %s754_s27, 1  ;;  %p786_p12 = por %p45_p1, %p44_p10 }
  0x15   : > { %s782_s12 = scalar_select %p29_p8, %s683_s24, %s31_s10  }
  0x16   : > { %p790_p13 = por %p110_p11, %p38_p7  ;;  %p116_p0 = scmp.eq.s32.totalorder %s433_s8, 1 }
  0x17   : > { %p40_p2 = por %p39_p9, %p38_p7  ;;  %s153_s15 = sand.u32 1, %s683_s24  }
  0x18   : > { %p795_p4 = por %p116_p0, %p44_p10  ;;  %p508_p6 = scmp.lt.s32.totalorder %s687_s25, 2 }
  0x19   : > { %s437_s17 = sshll.u32 %s153_s15, 3  ;;  %s438_s18 = sshll.u32 %s687_s25, 3 }
  0x1a   : > { %s161_s21 = scalar_lea.hbm %s880_s2, %s438_s18  ;;  %s157_s1 = scalar_lea.vmem [#allocation5], %s437_s17 }
  0x1b   : > { %s163_s0 = sshll.u32 %s161_s21, 4  ;;  %s165_s26 = sshll.u32 %s157_s1, 4  ;;  %s164_s0 = int_to_ptr.hbm [resolvable:$true] %s163_s0  ;;  %s166_s26 = int_to_ptr.vmem [resolvable:$true] %s165_s26 }
  0x1c   : > { %p804_p8 = pnand %p508_p6, %p40_p2  ;;  %s154_s30 = scalar_lea.sflag [#allocation6], %s153_s15 }
  0x1d   : > { %s587_s6 = sshra.s32 %s164_s0, 4  ;;  %s594_s11 = scalar_lea.hbm %s880_s2, 16  ;;  %s588_s6 = int_to_ptr.hbm [resolvable:$true] %s587_s6 }
  0x1e   : > { %s589_s7 = scalar_lea.hbm %s588_s6, 8  ;;  %p591_p9 = pneg %p804_p8 }
  0x1f   : > { %p590_p7 = scmp.ne.s32.totalorder %s588_s6, %s589_s7  ;;  %p595_p0 = scmp.lt.s32.totalorder %s588_s6, %s880_s2 }
  0x20   : > { %p596_p2 = scmp.lt.s32.totalorder %s594_s11, %s589_s7 }
  0x21   : > { %p592_p10 = pnand %p591_p9, %p590_p7 }
  0x22   : > { %p597_p6 = por %p596_p2, %p595_p0 }
  0x23   : > { %p593_p11 = pneg %p592_p10 }
  0x25   : > { %p598_p5 = pnand %p597_p6, %p593_p11 }
  0x27   : > { %601 = shalt.err (!%p598_p5)
}
  0x28   : > { %502 = dma.hbm_to_vmem [thread:$0]  (!%p804_p8), %s164_s0, 128, %s166_s26, %s154_s30  }
  0x29   : > { %174 = sbr.rel (%p759_p3) target bundleno = 462 (0x1ce), region = 32  ;;  %s821_s15 = sand.u32 (!%p759_p3), 1, %s679_s23  }
  0x2a   : > { %s440_s19 = sshll.u32 (!%p759_p3), %s821_s15, 3  ;;  %s177_s20 = scalar_lea.sflag (!%p759_p3), [#allocation6], %s821_s15 }
  0x2b   : > { %s180_s21 = scalar_lea.vmem (!%p759_p3), [#allocation5], %s440_s19 }
  0x2e   : > { %662 = dma.done.wait (%p786_p12), %s177_s20, 128  }
  0x2f   : > { %664 = vsyncadd (%p786_p12), %s177_s20, 4294967168 }
  0x30   : > { %666 = dma.done.wait (%p45_p1), [#allocation9], 1024  }
  0x31   : > { %668 = vsyncadd (%p45_p1), [#allocation9], 4294966272  ;;  %v835_v0 = vld [vmem:[%s180_s21] sm:$0xff]  ;;  %v692_v1 = vmov 128.0   ;;  %v693_v12 = vmov 127.0   ;;  %v484_v17 = vld [vmem:[#allocation8 + $0x28] sm:$0xff] }
  0x32   : > { %210 = vadd.xlane.f32.xlu0 %v835_v0  ;;  %549 = vrcp.f32 %v692_v1  ;;  %v486_v13 = vld [vmem:[#allocation8 + $0x38] sm:$0xff]  ;;  %v485_v14 = vld [vmem:[#allocation8 + $0x30] sm:$0xff]  ;;  %v483_v19 = vld [vmem:[#allocation8 + $0x20] sm:$0xff]  ;;  %s246_s28 = sld [smem:[#allocation3]]  ;;  %s476_s0 = sshll.u32 %s754_s27, 3 }
  0x33   : > { %551 = vrcp.f32 %v693_v12  ;;  %322 = vmatpush.bf16.msra.mxu0 %v486_v13  ;;  %v482_v21 = vld [vmem:[#allocation8 + $0x18] sm:$0xff]  ;;  %v481_v23 = vld [vmem:[#allocation8 + $0x10] sm:$0xff]  ;;  %v480_v25 = vld [vmem:[#allocation8 + $0x8] sm:$0xff]  ;;  %s250_s13 = sld [smem:[#allocation4]]  ;;  %s348_s6 = scalar_lea.hbm %s883_s5, %s476_s0 }
  0x34   : > { %v479_v28 = vld [vmem:[#allocation8] sm:$0xff]  ;;  %v548_v47 = vld [vmem:[%s882_s4] ss:$0 sm:$0xff]  ;;  %s208_s7 = scalar_lea.vmem [#allocation10], %s440_s19  ;;  %s352_s10 = sshll.u32 %s348_s6, 4  ;;  %s353_s10 = int_to_ptr.hbm [resolvable:$true] %s352_s10 }
  0x35   : > { %s350_s8 = sshll.u32 %s208_s7, 4  ;;  %s338_s27 = scalar_lea.sflag [#allocation7], %s821_s15  ;;  %s351_s8 = int_to_ptr.vmem [resolvable:$true] %s350_s8 }
  0x36   : > { %s631_s11 = sshra.s32 %s353_s10, 4  ;;  %s637_s19 = scalar_lea.hbm %s883_s5, 16  ;;  %s632_s11 = int_to_ptr.hbm [resolvable:$true] %s631_s11 }
  0x37   : > { %323 = vmatpush.bf16.msra.mxu0 %v485_v14  ;;  %s633_s17 = scalar_lea.hbm %s632_s11, 8  ;;  %p638_p12 = scmp.lt.s32.totalorder %s632_s11, %s883_s5 }
  0x38   : > { %v550_v2 = vpop.eup %549  ;;  %v247_v40 = vstv %s246_s28  ;;  %p634_p1 = scmp.ne.s32.totalorder %s632_s11, %s633_s17  ;;  %p639_p8 = scmp.lt.s32.totalorder %s637_s19, %s633_s17 }
  0x39   : > { %v213_v3 = vmul.f32 128.0, %v550_v2  ;;  %vm217_vm0 = vweird.f32 %v550_v2  ;;  %v552_v15 = vpop.eup %551  ;;  %v251_v43 = vstv %s250_s13 }
  0x3a   : > { %v225_v16 = vmul.f32 127.0, %v552_v15  ;;  %vm229_vm1 = vweird.f32 %v552_v15  ;;  %p635_p3 = pnand %p634_p1, %p790_p13  ;;  %p640_p7 = por %p639_p8, %p638_p12 }
  0x3b   : > { %v214_v4 = vsub.f32 1.0, %v213_v3  ;;  %324 = vmatpush.bf16.msra.mxu0 %v484_v17 }
  0x3c   : > { %v226_v18 = vsub.f32 1.0, %v225_v16  ;;  %p636_p5 = pneg %p635_p3 }
  0x3d   : > { %v215_v5 = vmul.f32 %v550_v2, %v214_v4 }
  0x3e   : > { %v227_v20 = vmul.f32 %v552_v15, %v226_v18  ;;  %p641_p9 = pnand %p640_p7, %p636_p5 }
  0x3f   : > { %v216_v6 = vadd.f32 %v550_v2, %v215_v5  ;;  %325 = vmatpush.bf16.msra.mxu0 %v483_v19 }
  0x40   : > { %v228_v22 = vadd.f32 %v552_v15, %v227_v20 }
  0x41   : > { %v218_v7 = vsel %vm217_vm0, %v550_v2, %v216_v6 }
  0x42   : > { %v230_v24 = vsel %vm229_vm1, %v552_v15, %v228_v22 }
  0x43   : > { %326 = vmatpush.bf16.msra.mxu0 %v482_v21 }
  0x47   : > { %327 = vmatpush.bf16.msra.mxu0 %v481_v23 }
  0x4b   : > { %328 = vmatpush.bf16.msra.mxu0 %v480_v25 }
  0x4f   : > { %329 = vmatpush.bf16.msra.mxu0 %v479_v28 }
  0xa5   : > { %v211_v8 = vpop.xlane.xlu0 %210 }
  0xa6   : > { %v219_v9 = vmul.f32 %v218_v7, %v211_v8 }
  0xa8   : > { %v220_v10 = vsub.f32 %v835_v0, %v219_v9 }
  0xaa   : > { %v221_v11 = vmul.f32 %v220_v10, %v220_v10 }
  0xac   : > { %222 = vadd.xlane.f32.xlu0 %v221_v11 }
 0x11f   : > { %v223_v26 = vpop.xlane.xlu0 %222 }
 0x120   : > { %v231_v27 = vmul.f32 %v230_v24, %v223_v26 }
 0x122   : > { %553 = vrsqrt.f32 %v231_v27  ;;  %vm239_vm2 = vcmp.eq.f32.partialorder %v231_v27, inf  ;;  %v242_v36 = vand.u32 2147483648, %v231_v27  ;;  %vm241_vm3 = vcmp.eq.f32.partialorder %v231_v27, 0.0 }
 0x128   : > { %v554_v29 = vpop.eup %553 }
 0x129   : > { %v233_v30 = vmul.f32 %v554_v29, %v231_v27 }
 0x12b   : > { %v234_v31 = vmul.f32 %v554_v29, %v233_v30 }
 0x12d   : > { %v235_v32 = vmul.f32 0.5, %v234_v31 }
 0x12f   : > { %v236_v33 = vsub.f32 1.5, %v235_v32 }
 0x131   : > { %v237_v34 = vmul.f32 %v554_v29, %v236_v33 }
 0x133   : > { %v238_v35 = vmul.f32 %v237_v34, %v231_v27 }
 0x135   : > { %v240_v37 = vsel %vm239_vm2, %v231_v27, %v238_v35 }
 0x136   : > { %v243_v38 = vsel %vm241_vm3, %v242_v36, %v240_v37 }
 0x137   : > { %v244_v39 = vadd.f32 1e-06, %v243_v38 }
 0x139   : > { %555 = vrcp.f32 %v244_v39 }
 0x13f   : > { %v556_v41 = vpop.eup %555 }
 0x140   : > { %v248_v42 = vmul.f32 %v556_v41, %v247_v40 }
 0x142   : > { %v249_v44 = vmul.f32 %v248_v42, %v220_v10 }
 0x144   : > { %v252_v45 = vadd.f32 %v251_v43, %v249_v44 }
 0x146   : > { %v253_v46 = vpack.c.bf16 %v252_v45, %v252_v45 }
 0x148   : > { %330 = vmatmul.bf16.vlgmr.msra.gmra.mxu0 %v253_v46 }
 0x1c5   : > { %v331_v48 = vpop.f32.mrf.mxu0 }
 0x1c6   : > { %v332_v49 = vadd.f32 %v548_v47, %v331_v48 }
 0x1c8   : > { %v335_v50 = vadd.f32 %v332_v49, %v835_v0 }
 0x1ca   : > { %336 = vst [vmem:[%s208_s7] sm:$0xff] %v335_v50 }
 0x1cb   : > { %644 = shalt.err (!%p641_p9)
}
 0x1cc   : > { %493 = dma.vmem_to_hbm [thread:$0]  (%p790_p13), %s351_s8, 128, %s353_s10, %s338_s27  }
 0x1cd   : > { %v333_v51 = vpop.f32.mrf.mxu0 }
 0x1ce PF: > { %s364_s15 = sand.u32 1, %s675_s22   ;;  %p889_p10 = scmp.ge.s32.totalorder %s687_s25, 2 }
 0x1cf   : > { %s365_s13 = scalar_lea.sflag [#allocation7], %s364_s15 }
 0x1d0   : > { %p504_p11 = pnand %p889_p10, %p795_p4 }
 0x1d2   : > { %p505_p0 = pneg %p504_p11 }
 0x1d4   : > { %670 = dma.done.wait (%p505_p0), %s365_s13, 128  }
 0x1d5   : > { %672 = vsyncadd (%p505_p0), %s365_s13, 4294967168  ;;  %p21_p2 = scmp.ge.s32.totalorder %s770_s9, 4   ;;  %s890_s22 = smov %s679_s23 }
 0x1d6   : > { %s891_s23 = smov %s683_s24  ;;  %s892_s24 = smov %s782_s12 }
 0x1d7   : > { %s893_s25 = smov %s770_s9  ;;  %23 = sbr.rel (!%p21_p2) target bundleno = 9 (0x9), region = 81 }
 0x1dc   :  { %371 = vsyncpa [#allocation6], 1 }
 0x1dd   :  { %373 = vsyncpa [#allocation6 + $0x1], 1 }
 0x1de   :  { %374 = vsyncpa [#allocation9], 1 }
 0x1df   :  { %375 = vsyncpa [#allocation7], 1 }
 0x1e0   :  { %377 = vsyncpa [#allocation7 + $0x1], 1 }

</bundles_post_ra>
